<compile_context>
chip_gen: v6e
topology: v6e:2x2x1
jax: 0.10.0
libtpu: 0.0.40
codegen_flags: <defaults>
</compile_context>

<pallas_src>
import math

import jax
import jax.numpy as jnp
from jax.experimental import pallas as pl
from jax.experimental.pallas import tpu as pltpu

# ---- config (small, consistent with a T5 config) ----
B = 2            # batch
S = 8            # sequence length (qlen == klen, self-attention, no cache)
D_MODEL = 32     # d_model
N_HEADS = 4      # num_heads
D_KV = 8         # d_kv
INNER = N_HEADS * D_KV          # inner_dim == 32
QKV_WIDTH = 3 * INNER           # 96   (fused Q|K|V columns)
QKV_PAD = 128                   # padded to one full lane width (lane-dense matmul)
NUM_BUCKETS = 32                # relative_attention_num_buckets
LN_EPS = 1e-6                   # layer_norm_epsilon
# dropout_rate is irrelevant in eval mode (F.dropout(training=False) == identity)


# -------------------- relative position bias (plain-JAX glue) -----------------
def _relative_position_bucket(relative_position, bidirectional=True,
                              num_buckets=32, max_distance=128):
    """Faithful port of T5Attention._relative_position_bucket."""
    ret = jnp.zeros_like(relative_position)
    n = -relative_position
    if bidirectional:
        num_buckets = num_buckets // 2
        ret = ret + (n < 0).astype(jnp.int32) * num_buckets
        n = jnp.abs(n)
    else:
        n = jnp.maximum(n, 0)
    max_exact = num_buckets // 2
    is_small = n < max_exact
    # clamp argument of log to avoid -inf for n==0 (that branch is unselected anyway)
    n_safe = jnp.maximum(n, 1).astype(jnp.float32)
    val_if_large = max_exact + (
        jnp.log(n_safe / max_exact) / math.log(max_distance / max_exact)
        * (num_buckets - max_exact)
    ).astype(jnp.int32)
    val_if_large = jnp.minimum(val_if_large, num_buckets - 1)
    ret = ret + jnp.where(is_small, n, val_if_large)
    return ret


def compute_position_bias(rel_bias_table, qlen, klen, is_decoder=False):
    """Returns (n_heads, qlen, klen) bias — T5Attention.compute_bias (squeezed)."""
    context_position = jnp.arange(qlen, dtype=jnp.int32)[:, None]
    memory_position = jnp.arange(klen, dtype=jnp.int32)[None, :]
    relative_position = memory_position - context_position
    rp_bucket = _relative_position_bucket(
        relative_position, bidirectional=not is_decoder, num_buckets=NUM_BUCKETS)
    values = rel_bias_table[rp_bucket]            # (qlen, klen, n_heads)
    return jnp.transpose(values, (2, 0, 1))       # (n_heads, qlen, klen)


# ------------------------------- Pallas kernel --------------------------------
def t5_self_attn_kernel(h_ref, lnw_ref, wqkv_ref, wo_ref, bias_ref,
                        out_ref, ctx_ref):
    x = h_ref[...]                                   # (B, S, D_MODEL)
    x2 = x.reshape(B * S, D_MODEL)                   # merge batch/seq rows
    lnw = lnw_ref[...]                               # (1, D_MODEL)

    # T5 RMS layernorm (no mean subtraction, no bias) — keep in f32
    var = jnp.mean(x2 * x2, axis=-1, keepdims=True)
    norm = x2 * jax.lax.rsqrt(var + LN_EPS) * lnw    # (B*S, D_MODEL)

    # Fused Q|K|V projection: one lane-dense (B*S, 128) MXU result tile.
    qkv = jnp.dot(norm, wqkv_ref[...], preferred_element_type=jnp.float32)
    q = qkv[:, 0 * INNER:1 * INNER].reshape(B, S, INNER)
    k = qkv[:, 1 * INNER:2 * INNER].reshape(B, S, INNER)
    v = qkv[:, 2 * INNER:3 * INNER].reshape(B, S, INNER)

    # Per-head attention, batched over B; context written into VMEM scratch.
    for h in range(N_HEADS):
        lo, hi = h * D_KV, (h + 1) * D_KV
        qh, kh, vh = q[:, :, lo:hi], k[:, :, lo:hi], v[:, :, lo:hi]  # (B, S, D_KV)
        # T5 does NOT scale scores by 1/sqrt(d_kv)
        s = jnp.einsum('bqd,bkd->bqk', qh, kh,
                       preferred_element_type=jnp.float32)           # (B, S, S)
        s = s + bias_ref[h]                                          # + (S, S)
        s = s - jnp.max(s, axis=-1, keepdims=True)
        e = jnp.exp(s)
        w = e * pl.reciprocal(jnp.sum(e, axis=-1, keepdims=True), approx=True)
        ctx_ref[:, :, lo:hi] = jnp.einsum('bqk,bkd->bqd', w, vh,
                                          preferred_element_type=jnp.float32)

    # Output projection + residual (residual uses the un-normed input).
    ctx = ctx_ref[...].reshape(B * S, INNER)
    attn_out = jnp.dot(ctx, wo_ref[...], preferred_element_type=jnp.float32)
    out_ref[...] = x + attn_out.reshape(B, S, D_MODEL)


def t5_layer_self_attention(hidden_states, ln_weight, wq, wk, wv, wo, pos_bias):
    """hidden_states: (B, S, D_MODEL) f32. Weights pre-transposed (in, out)."""
    # Fuse Q|K|V and zero-pad columns to one full lane width (128).
    wqkv = jnp.concatenate([wq, wk, wv], axis=1)                  # (D, 96)
    wqkv = jnp.pad(wqkv, ((0, 0), (0, QKV_PAD - QKV_WIDTH)))      # (D, 128)

    return pl.pallas_call(
        t5_self_attn_kernel,
        out_shape=jax.ShapeDtypeStruct((B, S, D_MODEL), jnp.float32),
        # No grid: single invocation, full-array blocks resident in VMEM.
        in_specs=[
            pl.BlockSpec((B, S, D_MODEL), lambda: (0, 0, 0)),     # hidden
            pl.BlockSpec((1, D_MODEL), lambda: (0, 0)),           # ln weight
            pl.BlockSpec((D_MODEL, QKV_PAD), lambda: (0, 0)),     # fused Wqkv
            pl.BlockSpec((INNER, D_MODEL), lambda: (0, 0)),       # Wo
            pl.BlockSpec((N_HEADS, S, S), lambda: (0, 0, 0)),     # pos bias
        ],
        out_specs=pl.BlockSpec((B, S, D_MODEL), lambda: (0, 0, 0)),
        scratch_shapes=[pltpu.VMEM((B, S, INNER), jnp.float32)],  # context slab
    )(hidden_states, ln_weight, wqkv, wo, pos_bias)


# ------------------------------ pure-JAX reference -----------------------------
def reference(h, lnw, wq, wk, wv, wo, bias):
    var = jnp.mean(h * h, axis=-1, keepdims=True)
    norm = h / jnp.sqrt(var + LN_EPS) * lnw[0]
    q = norm @ wq
    k = norm @ wk
    v = norm @ wv

    def split(x):
        return x.reshape(B, S, N_HEADS, D_KV).transpose(0, 2, 1, 3)

    qh, kh, vh = split(q), split(k), split(v)
    scores = jnp.einsum('bhqd,bhkd->bhqk', qh, kh) + bias[None]
    w = jax.nn.softmax(scores, axis=-1)
    ctx = jnp.einsum('bhqk,bhkd->bhqd', w, vh)
    ctx = ctx.transpose(0, 2, 1, 3).reshape(B, S, INNER)
    return h + ctx @ wo


# ----------------------------------- main --------------------------------------
if __name__ == "__main__":
    key = jax.random.PRNGKey(0)
    k_h, k_q, k_k, k_v, k_o, k_rb = jax.random.split(key, 6)

    hidden_states = jax.random.normal(k_h, (B, S, D_MODEL), dtype=jnp.float32)

    # Deterministic parameter init (shapes from T5Attention.__init__).
    # Stored as (in_features, out_features) == PyTorch weight transposed.
    wq = jax.random.normal(k_q, (D_MODEL, INNER), dtype=jnp.float32) * 0.05
    wk = jax.random.normal(k_k, (D_MODEL, INNER), dtype=jnp.float32) * 0.05
    wv = jax.random.normal(k_v, (D_MODEL, INNER), dtype=jnp.float32) * 0.05
    wo = jax.random.normal(k_o, (INNER, D_MODEL), dtype=jnp.float32) * 0.05
    ln_weight = jnp.ones((1, D_MODEL), dtype=jnp.float32)  # T5LayerNorm init = ones
    rel_bias_table = jax.random.normal(k_rb, (NUM_BUCKETS, N_HEADS),
                                       dtype=jnp.float32) * 0.1

    # position bias (encoder: is_decoder=False -> bidirectional buckets)
    pos_bias = compute_position_bias(rel_bias_table, S, S, is_decoder=False)

    out = t5_layer_self_attention(hidden_states, ln_weight, wq, wk, wv, wo, pos_bias)
    out = jax.block_until_ready(out)

    ref = reference(hidden_states, ln_weight, wq, wk, wv, wo, pos_bias)
    # approx reciprocal in the softmax introduces ~1e-4-scale deviations
    assert jnp.allclose(out, ref, atol=2e-3, rtol=2e-3), "mismatch vs reference"

    # TODO(synk): dropout layers are identity (eval mode); use_cache / attention
    # mask / head_mask paths are not exercised (all None/False as in defaults).
    print("KERNEL_OK")
</pallas_src>

<mosaic_0001>
module attributes {stable_mosaic.version = 11 : i64} {
  func.func @t5_self_attn_kernel(%arg0: memref<2x8x32xf32, #tpu.memory_space<vmem>>, %arg1: memref<1x32xf32, #tpu.memory_space<vmem>>, %arg2: memref<32x128xf32, #tpu.memory_space<vmem>>, %arg3: memref<32x32xf32, #tpu.memory_space<vmem>>, %arg4: memref<4x8x8xf32, #tpu.memory_space<vmem>>, %arg5: memref<2x8x32xf32, #tpu.memory_space<vmem>>, %arg6: memref<2x8x32xf32, #tpu.memory_space<vmem>>) attributes {dimension_semantics = [], scalar_prefetch = 0 : i64, scratch_operands = 1 : i64, tpu.core_type = #tpu.core_type<tc>} {
    %c0 = arith.constant 0 : index
    %c0_0 = arith.constant 0 : index
    %c0_1 = arith.constant 0 : index
    %0 = vector.load %arg0[%c0, %c0_0, %c0_1] : memref<2x8x32xf32, #tpu.memory_space<vmem>>, vector<2x8x32xf32>
    %1 = vector.shape_cast %0 : vector<2x8x32xf32> to vector<16x32xf32>
    %c0_2 = arith.constant 0 : index
    %c0_3 = arith.constant 0 : index
    %2 = vector.load %arg1[%c0_2, %c0_3] : memref<1x32xf32, #tpu.memory_space<vmem>>, vector<1x32xf32>
    %3 = arith.mulf %1, %1 : vector<16x32xf32>
    %cst = arith.constant dense<0.000000e+00> : vector<16xf32>
    %4 = vector.multi_reduction <add>, %3, %cst [1] : vector<16x32xf32> to vector<16xf32>
    %5 = vector.shape_cast %4 : vector<16xf32> to vector<16x1xf32>
    %cst_4 = arith.constant 3.200000e+01 : f32
    %6 = vector.broadcast %cst_4 : f32 to vector<16x1xf32>
    %7 = arith.divf %5, %6 : vector<16x1xf32>
    %cst_5 = arith.constant 9.99999997E-7 : f32
    %8 = vector.broadcast %cst_5 : f32 to vector<16x1xf32>
    %9 = arith.addf %7, %8 : vector<16x1xf32>
    %10 = math.rsqrt %9 : vector<16x1xf32>
    %11 = vector.broadcast %10 : vector<16x1xf32> to vector<16x32xf32>
    %12 = arith.mulf %1, %11 : vector<16x32xf32>
    %13 = vector.broadcast %2 : vector<1x32xf32> to vector<16x32xf32>
    %14 = arith.mulf %12, %13 : vector<16x32xf32>
    %c0_6 = arith.constant 0 : index
    %c0_7 = arith.constant 0 : index
    %15 = vector.load %arg2[%c0_6, %c0_7] : memref<32x128xf32, #tpu.memory_space<vmem>>, vector<32x128xf32>
    %cst_8 = arith.constant dense<0.000000e+00> : vector<16x128xf32>
    %16 = tpu.matmul %14, %15, %cst_8 {dimension_numbers = #tpu.dot_dimension_numbers<[1], [0], [0], [1], [0, 0, 1, 1], [], []>} : vector<16x32xf32>, vector<32x128xf32>, vector<16x128xf32> -> vector<16x128xf32>
    %17 = vector.extract_strided_slice %16 {offsets = [0, 0], sizes = [16, 32], strides = [1, 1]} : vector<16x128xf32> to vector<16x32xf32>
    %18 = vector.shape_cast %17 : vector<16x32xf32> to vector<2x8x32xf32>
    %19 = vector.extract_strided_slice %16 {offsets = [0, 32], sizes = [16, 32], strides = [1, 1]} : vector<16x128xf32> to vector<16x32xf32>
    %20 = vector.shape_cast %19 : vector<16x32xf32> to vector<2x8x32xf32>
    %21 = vector.extract_strided_slice %16 {offsets = [0, 64], sizes = [16, 32], strides = [1, 1]} : vector<16x128xf32> to vector<16x32xf32>
    %22 = vector.shape_cast %21 : vector<16x32xf32> to vector<2x8x32xf32>
    %23 = vector.extract_strided_slice %18 {offsets = [0, 0, 0], sizes = [2, 8, 8], strides = [1, 1, 1]} : vector<2x8x32xf32> to vector<2x8x8xf32>
    %24 = vector.extract_strided_slice %20 {offsets = [0, 0, 0], sizes = [2, 8, 8], strides = [1, 1, 1]} : vector<2x8x32xf32> to vector<2x8x8xf32>
    %25 = vector.extract_strided_slice %22 {offsets = [0, 0, 0], sizes = [2, 8, 8], strides = [1, 1, 1]} : vector<2x8x32xf32> to vector<2x8x8xf32>
    "tpu.trace_start"() <{level = 10 : i32, message = "bqd,bkd->bqk"}> : () -> ()
    %cst_9 = arith.constant dense<0.000000e+00> : vector<2x8x8xf32>
    %26 = tpu.matmul %23, %24, %cst_9 {dimension_numbers = #tpu.dot_dimension_numbers<[2], [2], [1], [1], [0, 0, 0, 1, 1, 1], [0], [0]>} : vector<2x8x8xf32>, vector<2x8x8xf32>, vector<2x8x8xf32> -> vector<2x8x8xf32>
    "tpu.trace_stop"() : () -> ()
    %c0_10 = arith.constant 0 : index
    %c0_11 = arith.constant 0 : index
    %c0_12 = arith.constant 0 : index
    %27 = vector.load %arg4[%c0_10, %c0_11, %c0_12] : memref<4x8x8xf32, #tpu.memory_space<vmem>>, vector<1x8x8xf32>
    %28 = vector.shape_cast %27 : vector<1x8x8xf32> to vector<8x8xf32>
    %29 = vector.shape_cast %28 : vector<8x8xf32> to vector<1x8x8xf32>
    %30 = vector.broadcast %29 : vector<1x8x8xf32> to vector<2x8x8xf32>
    %31 = arith.addf %26, %30 : vector<2x8x8xf32>
    %cst_13 = arith.constant dense<0xFF800000> : vector<2x8xf32>
    %32 = vector.multi_reduction <maximumf>, %31, %cst_13 [2] : vector<2x8x8xf32> to vector<2x8xf32>
    %33 = vector.shape_cast %32 : vector<2x8xf32> to vector<2x8x1xf32>
    %34 = vector.broadcast %33 : vector<2x8x1xf32> to vector<2x8x8xf32>
    %35 = arith.subf %31, %34 : vector<2x8x8xf32>
    %36 = math.exp %35 : vector<2x8x8xf32>
    %cst_14 = arith.constant dense<0.000000e+00> : vector<2x8xf32>
    %37 = vector.multi_reduction <add>, %36, %cst_14 [2] : vector<2x8x8xf32> to vector<2x8xf32>
    %38 = vector.shape_cast %37 : vector<2x8xf32> to vector<2x8x1xf32>
    %39 = tpu.reciprocal %38 {approx = true} : vector<2x8x1xf32> -> vector<2x8x1xf32>
    %40 = vector.broadcast %39 : vector<2x8x1xf32> to vector<2x8x8xf32>
    %41 = arith.mulf %36, %40 : vector<2x8x8xf32>
    "tpu.trace_start"() <{level = 10 : i32, message = "bqk,bkd->bqd"}> : () -> ()
    %cst_15 = arith.constant dense<0.000000e+00> : vector<2x8x8xf32>
    %42 = tpu.matmul %41, %25, %cst_15 {dimension_numbers = #tpu.dot_dimension_numbers<[2], [1], [1], [2], [0, 0, 0, 1, 1, 2], [0], [0]>} : vector<2x8x8xf32>, vector<2x8x8xf32>, vector<2x8x8xf32> -> vector<2x8x8xf32>
    "tpu.trace_stop"() : () -> ()
    %c0_16 = arith.constant 0 : index
    %c0_17 = arith.constant 0 : index
    %c0_18 = arith.constant 0 : index
    %43 = vector.load %arg6[%c0_16, %c0_17, %c0_18] : memref<2x8x32xf32, #tpu.memory_space<vmem>>, vector<2x8x8xf32>
    tpu.vector_store %arg6[%c0_16, %c0_17, %c0_18], %42 {strides = array<i32>} : memref<2x8x32xf32, #tpu.memory_space<vmem>>, vector<2x8x8xf32>,
    %44 = vector.extract_strided_slice %18 {offsets = [0, 0, 8], sizes = [2, 8, 8], strides = [1, 1, 1]} : vector<2x8x32xf32> to vector<2x8x8xf32>
    %45 = vector.extract_strided_slice %20 {offsets = [0, 0, 8], sizes = [2, 8, 8], strides = [1, 1, 1]} : vector<2x8x32xf32> to vector<2x8x8xf32>
    %46 = vector.extract_strided_slice %22 {offsets = [0, 0, 8], sizes = [2, 8, 8], strides = [1, 1, 1]} : vector<2x8x32xf32> to vector<2x8x8xf32>
    "tpu.trace_start"() <{level = 10 : i32, message = "bqd,bkd->bqk"}> : () -> ()
    %cst_19 = arith.constant dense<0.000000e+00> : vector<2x8x8xf32>
    %47 = tpu.matmul %44, %45, %cst_19 {dimension_numbers = #tpu.dot_dimension_numbers<[2], [2], [1], [1], [0, 0, 0, 1, 1, 1], [0], [0]>} : vector<2x8x8xf32>, vector<2x8x8xf32>, vector<2x8x8xf32> -> vector<2x8x8xf32>
    "tpu.trace_stop"() : () -> ()
    %c1 = arith.constant 1 : index
    %c0_20 = arith.constant 0 : index
    %c0_21 = arith.constant 0 : index
    %48 = vector.load %arg4[%c1, %c0_20, %c0_21] : memref<4x8x8xf32, #tpu.memory_space<vmem>>, vector<1x8x8xf32>
    %49 = vector.shape_cast %48 : vector<1x8x8xf32> to vector<8x8xf32>
    %50 = vector.shape_cast %49 : vector<8x8xf32> to vector<1x8x8xf32>
    %51 = vector.broadcast %50 : vector<1x8x8xf32> to vector<2x8x8xf32>
    %52 = arith.addf %47, %51 : vector<2x8x8xf32>
    %cst_22 = arith.constant dense<0xFF800000> : vector<2x8xf32>
    %53 = vector.multi_reduction <maximumf>, %52, %cst_22 [2] : vector<2x8x8xf32> to vector<2x8xf32>
    %54 = vector.shape_cast %53 : vector<2x8xf32> to vector<2x8x1xf32>
    %55 = vector.broadcast %54 : vector<2x8x1xf32> to vector<2x8x8xf32>
    %56 = arith.subf %52, %55 : vector<2x8x8xf32>
    %57 = math.exp %56 : vector<2x8x8xf32>
    %cst_23 = arith.constant dense<0.000000e+00> : vector<2x8xf32>
    %58 = vector.multi_reduction <add>, %57, %cst_23 [2] : vector<2x8x8xf32> to vector<2x8xf32>
    %59 = vector.shape_cast %58 : vector<2x8xf32> to vector<2x8x1xf32>
    %60 = tpu.reciprocal %59 {approx = true} : vector<2x8x1xf32> -> vector<2x8x1xf32>
    %61 = vector.broadcast %60 : vector<2x8x1xf32> to vector<2x8x8xf32>
    %62 = arith.mulf %57, %61 : vector<2x8x8xf32>
    "tpu.trace_start"() <{level = 10 : i32, message = "bqk,bkd->bqd"}> : () -> ()
    %cst_24 = arith.constant dense<0.000000e+00> : vector<2x8x8xf32>
    %63 = tpu.matmul %62, %46, %cst_24 {dimension_numbers = #tpu.dot_dimension_numbers<[2], [1], [1], [2], [0, 0, 0, 1, 1, 2], [0], [0]>} : vector<2x8x8xf32>, vector<2x8x8xf32>, vector<2x8x8xf32> -> vector<2x8x8xf32>
    "tpu.trace_stop"() : () -> ()
    %c0_25 = arith.constant 0 : index
    %c0_26 = arith.constant 0 : index
    %c8 = arith.constant 8 : index
    %64 = vector.load %arg6[%c0_25, %c0_26, %c8] : memref<2x8x32xf32, #tpu.memory_space<vmem>>, vector<2x8x8xf32>
    tpu.vector_store %arg6[%c0_25, %c0_26, %c8], %63 {strides = array<i32>} : memref<2x8x32xf32, #tpu.memory_space<vmem>>, vector<2x8x8xf32>,
    %65 = vector.extract_strided_slice %18 {offsets = [0, 0, 16], sizes = [2, 8, 8], strides = [1, 1, 1]} : vector<2x8x32xf32> to vector<2x8x8xf32>
    %66 = vector.extract_strided_slice %20 {offsets = [0, 0, 16], sizes = [2, 8, 8], strides = [1, 1, 1]} : vector<2x8x32xf32> to vector<2x8x8xf32>
    %67 = vector.extract_strided_slice %22 {offsets = [0, 0, 16], sizes = [2, 8, 8], strides = [1, 1, 1]} : vector<2x8x32xf32> to vector<2x8x8xf32>
    "tpu.trace_start"() <{level = 10 : i32, message = "bqd,bkd->bqk"}> : () -> ()
    %cst_27 = arith.constant dense<0.000000e+00> : vector<2x8x8xf32>
    %68 = tpu.matmul %65, %66, %cst_27 {dimension_numbers = #tpu.dot_dimension_numbers<[2], [2], [1], [1], [0, 0, 0, 1, 1, 1], [0], [0]>} : vector<2x8x8xf32>, vector<2x8x8xf32>, vector<2x8x8xf32> -> vector<2x8x8xf32>
    "tpu.trace_stop"() : () -> ()
    %c2 = arith.constant 2 : index
    %c0_28 = arith.constant 0 : index
    %c0_29 = arith.constant 0 : index
    %69 = vector.load %arg4[%c2, %c0_28, %c0_29] : memref<4x8x8xf32, #tpu.memory_space<vmem>>, vector<1x8x8xf32>
    %70 = vector.shape_cast %69 : vector<1x8x8xf32> to vector<8x8xf32>
    %71 = vector.shape_cast %70 : vector<8x8xf32> to vector<1x8x8xf32>
    %72 = vector.broadcast %71 : vector<1x8x8xf32> to vector<2x8x8xf32>
    %73 = arith.addf %68, %72 : vector<2x8x8xf32>
    %cst_30 = arith.constant dense<0xFF800000> : vector<2x8xf32>
    %74 = vector.multi_reduction <maximumf>, %73, %cst_30 [2] : vector<2x8x8xf32> to vector<2x8xf32>
    %75 = vector.shape_cast %74 : vector<2x8xf32> to vector<2x8x1xf32>
    %76 = vector.broadcast %75 : vector<2x8x1xf32> to vector<2x8x8xf32>
    %77 = arith.subf %73, %76 : vector<2x8x8xf32>
    %78 = math.exp %77 : vector<2x8x8xf32>
    %cst_31 = arith.constant dense<0.000000e+00> : vector<2x8xf32>
    %79 = vector.multi_reduction <add>, %78, %cst_31 [2] : vector<2x8x8xf32> to vector<2x8xf32>
    %80 = vector.shape_cast %79 : vector<2x8xf32> to vector<2x8x1xf32>
    %81 = tpu.reciprocal %80 {approx = true} : vector<2x8x1xf32> -> vector<2x8x1xf32>
    %82 = vector.broadcast %81 : vector<2x8x1xf32> to vector<2x8x8xf32>
    %83 = arith.mulf %78, %82 : vector<2x8x8xf32>
    "tpu.trace_start"() <{level = 10 : i32, message = "bqk,bkd->bqd"}> : () -> ()
    %cst_32 = arith.constant dense<0.000000e+00> : vector<2x8x8xf32>
    %84 = tpu.matmul %83, %67, %cst_32 {dimension_numbers = #tpu.dot_dimension_numbers<[2], [1], [1], [2], [0, 0, 0, 1, 1, 2], [0], [0]>} : vector<2x8x8xf32>, vector<2x8x8xf32>, vector<2x8x8xf32> -> vector<2x8x8xf32>
    "tpu.trace_stop"() : () -> ()
    %c0_33 = arith.constant 0 : index
    %c0_34 = arith.constant 0 : index
    %c16 = arith.constant 16 : index
    %85 = vector.load %arg6[%c0_33, %c0_34, %c16] : memref<2x8x32xf32, #tpu.memory_space<vmem>>, vector<2x8x8xf32>
    tpu.vector_store %arg6[%c0_33, %c0_34, %c16], %84 {strides = array<i32>} : memref<2x8x32xf32, #tpu.memory_space<vmem>>, vector<2x8x8xf32>,
    %86 = vector.extract_strided_slice %18 {offsets = [0, 0, 24], sizes = [2, 8, 8], strides = [1, 1, 1]} : vector<2x8x32xf32> to vector<2x8x8xf32>
    %87 = vector.extract_strided_slice %20 {offsets = [0, 0, 24], sizes = [2, 8, 8], strides = [1, 1, 1]} : vector<2x8x32xf32> to vector<2x8x8xf32>
    %88 = vector.extract_strided_slice %22 {offsets = [0, 0, 24], sizes = [2, 8, 8], strides = [1, 1, 1]} : vector<2x8x32xf32> to vector<2x8x8xf32>
    "tpu.trace_start"() <{level = 10 : i32, message = "bqd,bkd->bqk"}> : () -> ()
    %cst_35 = arith.constant dense<0.000000e+00> : vector<2x8x8xf32>
    %89 = tpu.matmul %86, %87, %cst_35 {dimension_numbers = #tpu.dot_dimension_numbers<[2], [2], [1], [1], [0, 0, 0, 1, 1, 1], [0], [0]>} : vector<2x8x8xf32>, vector<2x8x8xf32>, vector<2x8x8xf32> -> vector<2x8x8xf32>
    "tpu.trace_stop"() : () -> ()
    %c3 = arith.constant 3 : index
    %c0_36 = arith.constant 0 : index
    %c0_37 = arith.constant 0 : index
    %90 = vector.load %arg4[%c3, %c0_36, %c0_37] : memref<4x8x8xf32, #tpu.memory_space<vmem>>, vector<1x8x8xf32>
    %91 = vector.shape_cast %90 : vector<1x8x8xf32> to vector<8x8xf32>
    %92 = vector.shape_cast %91 : vector<8x8xf32> to vector<1x8x8xf32>
    %93 = vector.broadcast %92 : vector<1x8x8xf32> to vector<2x8x8xf32>
    %94 = arith.addf %89, %93 : vector<2x8x8xf32>
    %cst_38 = arith.constant dense<0xFF800000> : vector<2x8xf32>
    %95 = vector.multi_reduction <maximumf>, %94, %cst_38 [2] : vector<2x8x8xf32> to vector<2x8xf32>
    %96 = vector.shape_cast %95 : vector<2x8xf32> to vector<2x8x1xf32>
    %97 = vector.broadcast %96 : vector<2x8x1xf32> to vector<2x8x8xf32>
    %98 = arith.subf %94, %97 : vector<2x8x8xf32>
    %99 = math.exp %98 : vector<2x8x8xf32>
    %cst_39 = arith.constant dense<0.000000e+00> : vector<2x8xf32>
    %100 = vector.multi_reduction <add>, %99, %cst_39 [2] : vector<2x8x8xf32> to vector<2x8xf32>
    %101 = vector.shape_cast %100 : vector<2x8xf32> to vector<2x8x1xf32>
    %102 = tpu.reciprocal %101 {approx = true} : vector<2x8x1xf32> -> vector<2x8x1xf32>
    %103 = vector.broadcast %102 : vector<2x8x1xf32> to vector<2x8x8xf32>
    %104 = arith.mulf %99, %103 : vector<2x8x8xf32>
    "tpu.trace_start"() <{level = 10 : i32, message = "bqk,bkd->bqd"}> : () -> ()
    %cst_40 = arith.constant dense<0.000000e+00> : vector<2x8x8xf32>
    %105 = tpu.matmul %104, %88, %cst_40 {dimension_numbers = #tpu.dot_dimension_numbers<[2], [1], [1], [2], [0, 0, 0, 1, 1, 2], [0], [0]>} : vector<2x8x8xf32>, vector<2x8x8xf32>, vector<2x8x8xf32> -> vector<2x8x8xf32>
    "tpu.trace_stop"() : () -> ()
    %c0_41 = arith.constant 0 : index
    %c0_42 = arith.constant 0 : index
    %c24 = arith.constant 24 : index
    %106 = vector.load %arg6[%c0_41, %c0_42, %c24] : memref<2x8x32xf32, #tpu.memory_space<vmem>>, vector<2x8x8xf32>
    tpu.vector_store %arg6[%c0_41, %c0_42, %c24], %105 {strides = array<i32>} : memref<2x8x32xf32, #tpu.memory_space<vmem>>, vector<2x8x8xf32>,
    %c0_43 = arith.constant 0 : index
    %c0_44 = arith.constant 0 : index
    %c0_45 = arith.constant 0 : index
    %107 = vector.load %arg6[%c0_43, %c0_44, %c0_45] : memref<2x8x32xf32, #tpu.memory_space<vmem>>, vector<2x8x32xf32>
    %108 = vector.shape_cast %107 : vector<2x8x32xf32> to vector<16x32xf32>
    %c0_46 = arith.constant 0 : index
    %c0_47 = arith.constant 0 : index
    %109 = vector.load %arg3[%c0_46, %c0_47] : memref<32x32xf32, #tpu.memory_space<vmem>>, vector<32x32xf32>
    %cst_48 = arith.constant dense<0.000000e+00> : vector<16x32xf32>
    %110 = tpu.matmul %108, %109, %cst_48 {dimension_numbers = #tpu.dot_dimension_numbers<[1], [0], [0], [1], [0, 0, 1, 1], [], []>} : vector<16x32xf32>, vector<32x32xf32>, vector<16x32xf32> -> vector<16x32xf32>
    %111 = vector.shape_cast %110 : vector<16x32xf32> to vector<2x8x32xf32>
    %112 = arith.addf %0, %111 : vector<2x8x32xf32>
    %c0_49 = arith.constant 0 : index
    %c0_50 = arith.constant 0 : index
    %c0_51 = arith.constant 0 : index
    %113 = vector.load %arg5[%c0_49, %c0_50, %c0_51] : memref<2x8x32xf32, #tpu.memory_space<vmem>>, vector<2x8x32xf32>
    tpu.vector_store %arg5[%c0_49, %c0_50, %c0_51], %112 {strides = array<i32>} : memref<2x8x32xf32, #tpu.memory_space<vmem>>, vector<2x8x32xf32>,
    return
  }
}

</mosaic_0001>

<bundles_post_ra>
// kernel: tpu_custom_call.1
= control target key start
LH: loop header
LB: loop body
LE: loop exit
PB: predicated region body
PF: predicated region fallthrough
CT: control target
= control target key end

     0   :  { %10 = vsyncpa [#allocation4], 0  ;;  %s2235_s0 = inlined_call_operand.hbm [shape: f32[2,8,32], index: 0, kind: input, shape index: {}]   ;;  %s2236_s1 = inlined_call_operand.vmem [shape: f32[1,32], index: 1, kind: input, shape index: {}]   ;;  %s2237_s2 = inlined_call_operand.hbm [shape: f32[32,128], index: 2, kind: input, shape index: {}]   ;;  %s2238_s3 = inlined_call_operand.hbm [shape: f32[32,32], index: 3, kind: input, shape index: {}]   ;;  %s2239_s4 = inlined_call_operand.hbm [shape: f32[4,8,8], index: 4, kind: input, shape index: {}]   ;;  %s2240_s5 = inlined_call_operand.hbm [shape: f32[2,8,32], index: 5, kind: output, shape index: {}]  }
   0x1   :  { %11 = vsyncpa [#allocation7], 0 }
   0x2   :  { %12 = vsyncpa [#allocation10], 0 }
   0x3   :  { %13 = vsyncpa [#allocation5], 0  ;;  %s2002_s18 = smov [#allocation6]   ;;  %s2003_s20 = smov [#allocation3]  }
   0x4   :  { %s33_s19 = sshll.u32 %s2002_s18, 4  ;;  %s19_s21 = sshll.u32 %s2003_s20, 4  ;;  %s34_s19 = int_to_ptr.vmem [resolvable:$true] %s33_s19  ;;  %s20_s21 = int_to_ptr.vmem [resolvable:$true] %s19_s21 }
   0x5   :  { %s1902_s22 = scalar_lea.vmem %s34_s19, 512  ;;  %p1907_p1 = scmp.lt.s32.totalorder %s34_s19, %s34_s19 }
   0x6   :  { %p1903_p0 = scmp.ne.s32.totalorder %s34_s19, %s1902_s22  ;;  %p1908_p2 = scmp.lt.s32.totalorder %s1902_s22, %s1902_s22 }
   0x8   :  { %p1909_p3 = por %p1908_p2, %p1907_p1 }
   0xa   :  { %p1910_p4 = pnand %p1909_p3, %p1903_p0 }
   0xc   :  { %1913 = shalt.err (!%p1910_p4)
}
   0xd   :  { %s2004_s23 = smov 128   ;;  %s2005_s24 = smov 8  }
   0xe   :  { %39 = dma.hbm_to_vmem [thread:$0]  %s2237_s2, 512, %s34_s19, [#allocation7], %s2004_s23, %s2004_s23, %s2005_s24  }
   0xf   :  { %s1922_s27 = scalar_lea.vmem %s20_s21, 256  ;;  %p1927_p6 = scmp.lt.s32.totalorder %s20_s21, %s20_s21 }
  0x10   :  { %p1923_p5 = scmp.ne.s32.totalorder %s20_s21, %s1922_s27  ;;  %p1928_p7 = scmp.lt.s32.totalorder %s1922_s27, %s1922_s27 }
  0x12   :  { %p1929_p8 = por %p1928_p7, %p1927_p6 }
  0x14   :  { %p1930_p9 = pnand %p1929_p8, %p1923_p5 }
  0x16   :  { %1933 = shalt.err (!%p1930_p9)
}
  0x17   :  { %25 = dma.hbm_to_vmem [thread:$0]  %s2235_s0, 256, %s20_s21, [#allocation4], %s2004_s23, %s2004_s23, %s2005_s24  }
  0x18   :  { %s2006_s30 = smov [#allocation8]   ;;  %s2007_s7 = smov [#allocation9]  }
  0x19   :  { %s45_s6 = sshll.u32 %s2006_s30, 4  ;;  %s57_s8 = sshll.u32 %s2007_s7, 4  ;;  %s46_s6 = int_to_ptr.vmem [resolvable:$true] %s45_s6  ;;  %s58_s8 = int_to_ptr.vmem [resolvable:$true] %s57_s8 }
  0x1a   :  { %s1942_s2 = scalar_lea.vmem %s46_s6, 512  ;;  %p1947_p11 = scmp.lt.s32.totalorder %s46_s6, %s46_s6 }
  0x1b   :  { %p1943_p10 = scmp.ne.s32.totalorder %s46_s6, %s1942_s2  ;;  %p1948_p12 = scmp.lt.s32.totalorder %s1942_s2, %s1942_s2 }
  0x1d   :  { %p1949_p13 = por %p1948_p12, %p1947_p11 }
  0x1f   :  { %p1950_p0 = pnand %p1949_p13, %p1943_p10 }
  0x21   :  { %1953 = shalt.err (!%p1950_p0)
}
  0x22   :  { %51 = dma.hbm_to_vmem [thread:$0]  %s2238_s3, 512, %s46_s6, [#allocation7], %s2004_s23, %s2004_s23, %s2005_s24  }
  0x23   :  { %s1962_s0 = scalar_lea.vmem %s58_s8, 512  ;;  %p1967_p2 = scmp.lt.s32.totalorder %s58_s8, %s58_s8 }
  0x24   :  { %p1963_p1 = scmp.ne.s32.totalorder %s58_s8, %s1962_s0  ;;  %p1968_p3 = scmp.lt.s32.totalorder %s1962_s0, %s1962_s0 }
  0x26   :  { %p1969_p4 = por %p1968_p3, %p1967_p2 }
  0x28   :  { %p1970_p5 = pnand %p1969_p4, %p1963_p1 }
  0x2a   :  { %1973 = shalt.err (!%p1970_p5)
}
  0x2b   :  { %63 = dma.hbm_to_vmem [thread:$0]  %s2239_s4, 512, %s58_s8, [#allocation10], %s2004_s23, %s2004_s23, %s2005_s24  }
  0x2c   :  { %1994 = dma.done.wait [#allocation4], 256  }
  0x2d   :  { %1995 = vsyncadd [#allocation4], 4294967040 }
  0x2e   :  { %1996 = dma.done.wait [#allocation7], 1024  }
  0x2f   :  { %1997 = vsyncadd [#allocation7], 4294966272 }
  0x30   :  { %1998 = dma.done.wait [#allocation10], 512  }
  0x31   :  { %1999 = vsyncadd [#allocation10], 4294966784  ;;  %v2078_v0 = vld [vmem:[#allocation3] sm:$0xff]  ;;  %vm81_vm0 = vcmask 261120   ;;  %v2080_v1 = vld [vmem:[#allocation3 + $0x8] sm:$0xff]  ;;  %v2008_v23 = vmov 0.0  }
  0x32   :  { %v79_v2 = vmul.f32 %v2078_v0, %v2078_v0  ;;  %v80_v3 = vmul.f32 %v2080_v1, %v2080_v1  ;;  %v108_v6 = vld [vmem:[#allocation6 + $0x18] sm:$0xff]  ;;  %v107_v7 = vld [vmem:[#allocation6 + $0x10] sm:$0xff]  ;;  %v106_v8 = vld [vmem:[#allocation6 + $0x8] sm:$0xff]  ;;  %1745 = vmatprep.subr.mxu1 %v2008_v23  ;;  %vm2009_vm1 = vmmov 0   ;;  %vm194_vm2 = vcmask 64512   ;;  %s2011_s13 = smov 88  }
  0x33   :  { %1734 = vmatprep.subr.mxu0 %v108_v6  ;;  %v105_v9 = vld [vmem:[#allocation6] sm:$0xff]  ;;  %1747 = vmatprep.mubr.msk.f32.mxu1 %vm2009_vm1, %v2008_v23  ;;  %s2012_s14 = smov 64   ;;  %s2013_s15 = smov 120   ;;  %v523_v59 = vld [vmem:[#allocation9 + $0x8] sm:$0xff]  ;;  %vm862_vm3 = vcmask 130112   ;;  %vm1205_vm4 = vcmask 195712  }
  0x34   :  { %v82_v4 = vsel %vm81_vm0, %v79_v2, 0.0  ;;  %v85_v5 = vsel %vm81_vm0, %v80_v3, 0.0  ;;  %1735 = vmatpush3.msra.mxu0 %v108_v6  ;;  %v1661_v17 = vld [vmem:[%s2236_s1] ss:$0 sm:$0xff]  ;;  %s2010_s1 = smov 96   ;;  %s2014_s16 = smov 56  }
  0x35   :  { %83 = vadd.xlane.f32.xlu0 %v82_v4  ;;  %1736 = vmatprep.subr.mxu0 %v107_v7  ;;  %v190_v28 = vld [vmem:[#allocation9] sm:$0xff]  ;;  %s2015_s17 = smov 80   ;;  %s2016_s18 = smov 112   ;;  %vm1548_vm5 = vcmask 261312  }
  0x36   :  { %1737 = vmatpush3.msra.mxu0 %v107_v7  ;;  %s2017_s19 = smov 48   ;;  %s2018_s20 = smov 72  }
  0x37   :  { %1738 = vmatprep.subr.mxu0 %v106_v8  ;;  %s2019_s21 = smov 104   ;;  %s2020_s22 = smov 40  }
  0x38   :  { %1739 = vmatpush3.msra.mxu0 %v106_v8  ;;  %s2021_s25 = smov 16   ;;  %s2022_s26 = smov 24  }
  0x39   :  { %86 = vadd.xlane.f32.xlu0 %v85_v5  ;;  %1740 = vmatprep.subr.mxu0 %v105_v9  ;;  %s2023_s27 = smov [#allocation11]  }
  0x3a   :  { %1741 = vmatpush3.msra.mxu0 %v105_v9  ;;  %s1647_s28 = sshll.u32 %s2023_s27, 4  ;;  %s1648_s28 = int_to_ptr.vmem [resolvable:$true] %s1647_s28 }
  0x3b   :  { %1765 = vmatprep.subr.mxu0 %v2008_v23  ;;  %s1974_s29 = scalar_lea.vmem %s1648_s28, 256  ;;  %p1979_p7 = scmp.lt.s32.totalorder %s1648_s28, %s1648_s28 }
  0x3c   :  { %p1975_p6 = scmp.ne.s32.totalorder %s1648_s28, %s1974_s29  ;;  %p1980_p8 = scmp.lt.s32.totalorder %s1974_s29, %s1974_s29 }
  0x3e   :  { %p1981_p9 = por %p1980_p8, %p1979_p7 }
  0x40   :  { %p1982_p10 = pnand %p1981_p9, %p1975_p6 }
  0xbe   :  { %v84_v10 = vpop.xlane.xlu0 %83 }
  0xbf   :  { %v89_v11 = vmul.f32 0.03125, %v84_v10 }
  0xc1   :  { %v91_v12 = vadd.f32 1e-06, %v89_v11 }
  0xc2   :  { %v87_v13 = vpop.xlane.xlu0 %86 }
  0xc3   :  { %1858 = vrsqrt.f32 %v91_v12  ;;  %v90_v14 = vmul.f32 0.03125, %v87_v13 }
  0xc5   :  { %v92_v15 = vadd.f32 1e-06, %v90_v14 }
  0xc7   :  { %1860 = vrsqrt.f32 %v92_v15 }
  0xd0   :  { %v1859_v16 = vpop.eup %1858 }
  0xd1   :  { %v95_v18 = vmul.f32 %v1859_v16, %v2078_v0 }
  0xd3   :  { %v103_v19 = vmul.f32 %v1661_v17, %v95_v18 }
  0xd4   :  { %v1861_v20 = vpop.eup %1860 }
  0xd5   :  { %v96_v21 = vmul.f32 %v1861_v20, %v2080_v1  ;;  %1742 = vmatprep.mubr.msk.f32.mxu0 %vm81_vm0, %v103_v19 }
  0xd7   :  { %v104_v22 = vmul.f32 %v1661_v17, %v96_v21 }
  0xd9   :  { %1743 = vmatmul.mubr.msk.f32.vlgmr.msra.gmra.mxu0 %vm81_vm0, %v104_v22 }
  0xda   :  { %1767 = vmatprep.mubr.msk.f32.mxu0 %vm2009_vm1, %v2008_v23 }
 0x199   :  { %v2101_v24 = vpop.f32.mrf.mxu0 }
 0x19b   :  { %v2103_v25 = vpop.f32.mrf.mxu0 }
 0x19c   :  { %192 = vrot.lane.b32.xlu1 %v2103_v25, %s2010_s1 }
 0x1a0   :  { %270 = vrot.lane.b32.xlu1 %v2101_v24, %s2010_s1 }
 0x20e   :  { %v193_v26 = vpop.permute.xlu1 %192 }
 0x20f   :  { %1746 = vmatpush3.xpose.msk.msra.mxu1 %vm194_vm2, %v193_v26 }
 0x210   :  { %1750 = vmatprep.subr.mxu1 %v2008_v23 }
 0x212   :  { %1748 = vmatmul.mubr.msk.f32.vlgmr.msra.gmra.mxu1 %vm194_vm2, %v2103_v25  ;;  %v271_v27 = vpop.permute.xlu1 %270 }
 0x213   :  { %1751 = vmatpush3.xpose.msk.msra.mxu1 %vm194_vm2, %v271_v27  ;;  %1752 = vmatprep.mubr.msk.f32.mxu1 %vm2009_vm1, %v2008_v23 }
 0x214   :  { %1755 = vmatprep.subr.mxu1 %v2008_v23 }
 0x216   :  { %1753 = vmatmul.mubr.msk.f32.vlgmr.msra.gmra.mxu1 %vm194_vm2, %v2101_v24 }
 0x217   :  { %1757 = vmatprep.mubr.msk.f32.mxu1 %vm2009_vm1, %v2008_v23 }
 0x2d2   :  { %v265_v29 = vpop.f32.mrf.mxu1 }
 0x2d3   :  { %v266_v30 = vadd.f32 %v265_v29, %v190_v28 }
 0x2d4   :  { %v1749_v31 = vpop.f32.mrf.mxu1 }
 0x2d5   :  { %v346_v32 = vsel %vm194_vm2, %v266_v30, -inf }
 0x2d6   :  { %347 = vmax.xlane.f32.xlu0 %v346_v32  ;;  %v342_v33 = vpop.f32.mrf.mxu1 }
 0x2d7   :  { %v343_v34 = vadd.f32 %v342_v33, %v190_v28 }
 0x2d8   :  { %v1754_v35 = vpop.f32.mrf.mxu1 }
 0x2d9   :  { %v349_v36 = vsel %vm194_vm2, %v343_v34, -inf }
 0x2da   :  { %350 = vmax.xlane.f32.xlu1 %v349_v36 }
 0x2eb   :  { %526 = vrot.lane.b32.xlu1 %v2103_v25, %s2011_s13 }
 0x2ec   :  { %368 = vrot.lane.b32.xlu0 %v2103_v25, %s2012_s14 }
 0x2f0   :  { %444 = vrot.lane.b32.xlu0 %v2101_v24, %s2012_s14 }
 0x2f4   :  { %604 = vrot.lane.b32.xlu0 %v2101_v24, %s2011_s13 }
 0x35f   :  { %v348_v37 = vpop.xlane.xlu0 %347 }
 0x360   :  { %v352_v38 = vsub.f32 %v266_v30, %v348_v37  ;;  %v866_v37 = vld [vmem:[#allocation9 + $0x10] sm:$0xff] }
 0x362   :  { %v354_v39 = vmul.f32 1.442695, %v352_v38 }
 0x363   :  { %v369_v40 = vpop.permute.xlu0 %368  ;;  %v351_v41 = vpop.xlane.xlu1 %350 }
 0x364   :  { %1862 = vpow2.f32 %v354_v39  ;;  %v353_v42 = vsub.f32 %v343_v34, %v351_v41  ;;  %1756 = vmatpush3.msra.mxu1 %v369_v40 }
 0x365   :  { %1760 = vmatprep.subr.mxu1 %v2008_v23 }
 0x366   :  { %v356_v43 = vmul.f32 1.442695, %v353_v42 }
 0x367   :  { %v527_v44 = vpop.permute.xlu1 %526  ;;  %v445_v49 = vpop.permute.xlu0 %444 }
 0x368   :  { %1864 = vpow2.f32 %v356_v43  ;;  %1766 = vmatpush3.xpose.msk.msra.mxu0 %vm194_vm2, %v527_v44 }
 0x369   :  { %1775 = vmatprep.subr.mxu0 %v2008_v23 }
 0x36b   :  { %v605_v50 = vpop.permute.xlu0 %604 }
 0x371   :  { %v1863_v45 = vpop.eup %1862 }
 0x372   :  { %v358_v46 = vsel %vm194_vm2, %v1863_v45, 0.0 }
 0x373   :  { %359 = vadd.xlane.f32.xlu0 %v358_v46 }
 0x375   :  { %v1865_v47 = vpop.eup %1864 }
 0x376   :  { %v361_v48 = vsel %vm194_vm2, %v1865_v47, 0.0 }
 0x377   :  { %362 = vadd.xlane.f32.xlu0 %v361_v48 }
 0x38d   :  { %524 = vrot.lane.b32.xlu0 %v2103_v25, %s2013_s15 }
 0x391   :  { %602 = vrot.lane.b32.xlu0 %v2101_v24, %s2013_s15 }
 0x3fc   :  { %v360_v51 = vpop.xlane.xlu0 %359 }
 0x3fd   :  { %1866 = vrcp.f32 %v360_v51 }
 0x400   :  { %v363_v52 = vpop.xlane.xlu0 %362 }
 0x401   :  { %1868 = vrcp.f32 %v363_v52 }
 0x404   :  { %v525_v53 = vpop.permute.xlu0 %524 }
 0x405   :  { %1768 = vmatmul.mubr.msk.f32.vlgmr.msra.gmra.mxu0 %vm194_vm2, %v525_v53 }
 0x406   :  { %1777 = vmatprep.mubr.msk.f32.mxu0 %vm2009_vm1, %v2008_v23 }
 0x408   :  { %v603_v58 = vpop.permute.xlu0 %602 }
 0x40a   :  { %v1867_v54 = vpop.eup %1866 }
 0x40b   :  { %v366_v55 = vmul.f32 %v1867_v54, %v1863_v45 }
 0x40d   :  { %1758 = vmatmul.mubr.msk.f32.vlgmr.msra.gmra.mxu1 %vm194_vm2, %v366_v55 }
 0x40e   :  { %v1869_v56 = vpop.eup %1868  ;;  %1761 = vmatpush3.msra.mxu1 %v445_v49  ;;  %1762 = vmatprep.mubr.msk.f32.mxu1 %vm2009_vm1, %v2008_v23 }
 0x40f   :  { %1770 = vmatprep.subr.mxu1 %v2008_v23  ;;  %v367_v57 = vmul.f32 %v1869_v56, %v1865_v47 }
 0x411   :  { %1763 = vmatmul.mubr.msk.f32.vlgmr.msra.gmra.mxu1 %vm194_vm2, %v367_v57 }
 0x412   :  { %1771 = vmatpush3.xpose.msk.msra.mxu1 %vm194_vm2, %v605_v50  ;;  %1772 = vmatprep.mubr.msk.f32.mxu1 %vm2009_vm1, %v2008_v23 }
 0x413   :  { %1780 = vmatprep.subr.mxu1 %v2008_v23 }
 0x415   :  { %1773 = vmatmul.mubr.msk.f32.vlgmr.msra.gmra.mxu1 %vm194_vm2, %v603_v58 }
 0x416   :  { %1782 = vmatprep.mubr.msk.f32.mxu1 %vm2009_vm1, %v2008_v23 }
 0x4c5   :  { %v598_v60 = vpop.f32.mrf.mxu0 }
 0x4c6   :  { %v599_v61 = vadd.f32 %v598_v60, %v523_v59 }
 0x4c7   :  { %v1769_v62 = vpop.f32.mrf.mxu0 }
 0x4c8   :  { %v680_v63 = vsel %vm194_vm2, %v599_v61, -inf }
 0x4c9   :  { %681 = vmax.xlane.f32.xlu0 %v680_v63 }
 0x4cd   :  { %v440_v2 = vpop.f32.mrf.mxu1 }
 0x4ce   :  { %520 = vst.msk [vmem:[#allocation2] sm:$0xff] %vm194_vm2, %v440_v2 }
 0x4cf   :  { %v1759_v3 = vpop.f32.mrf.mxu1 }
 0x4d1   :  { %v516_v4 = vpop.f32.mrf.mxu1 }
 0x4d2   :  { %521 = vst.msk [vmem:[#allocation2 + $0x8] sm:$0xff] %vm194_vm2, %v516_v4 }
 0x4d3   :  { %v1764_v5 = vpop.f32.mrf.mxu1 }
 0x4d5   :  { %v676_v6 = vpop.f32.mrf.mxu1 }
 0x4d6   :  { %v677_v7 = vadd.f32 %v676_v6, %v523_v59 }
 0x4d7   :  { %v1774_v8 = vpop.f32.mrf.mxu1 }
 0x4d8   :  { %v683_v9 = vsel %vm194_vm2, %v677_v7, -inf }
 0x4d9   :  { %684 = vmax.xlane.f32.xlu1 %v683_v9 }
 0x4ea   :  { %778 = vrot.lane.b32.xlu1 %v2101_v24, %s2014_s16 }
 0x4ee   :  { %869 = vrot.lane.b32.xlu1 %v2103_v25, %s2015_s17 }
 0x4f2   :  { %947 = vrot.lane.b32.xlu1 %v2101_v24, %s2015_s17 }
 0x4f6   :  { %945 = vrot.lane.b32.xlu1 %v2101_v24, %s2016_s18 }
 0x552   :  { %v682_v10 = vpop.xlane.xlu0 %681 }
 0x553   :  { %v686_v11 = vsub.f32 %v599_v61, %v682_v10  ;;  %v1209_v10 = vld [vmem:[#allocation9 + $0x18] sm:$0xff] }
 0x555   :  { %v688_v12 = vmul.f32 1.442695, %v686_v11 }
 0x557   :  { %1870 = vpow2.f32 %v688_v12 }
 0x562   :  { %v685_v13 = vpop.xlane.xlu1 %684 }
 0x563   :  { %v687_v17 = vsub.f32 %v677_v7, %v685_v13 }
 0x564   :  { %v1871_v14 = vpop.eup %1870 }
 0x565   :  { %v692_v15 = vsel %vm194_vm2, %v1871_v14, 0.0  ;;  %v690_v18 = vmul.f32 1.442695, %v687_v17 }
 0x566   :  { %693 = vadd.xlane.f32.xlu0 %v692_v15  ;;  %v779_v16 = vpop.permute.xlu1 %778 }
 0x567   :  { %1781 = vmatpush3.msra.mxu1 %v779_v16  ;;  %1872 = vpow2.f32 %v690_v18 }
 0x568   :  { %1790 = vmatprep.subr.mxu1 %v2008_v23 }
 0x56a   :  { %v870_v28 = vpop.permute.xlu1 %869 }
 0x56e   :  { %v948_v32 = vpop.permute.xlu1 %947 }
 0x572   :  { %v946_v34 = vpop.permute.xlu1 %945 }
 0x574   :  { %v1873_v19 = vpop.eup %1872 }
 0x575   :  { %v695_v20 = vsel %vm194_vm2, %v1873_v19, 0.0 }
 0x57c   :  { %702 = vrot.lane.b32.xlu0 %v2103_v25, %s2014_s16 }
 0x59b   :  { %696 = vadd.xlane.f32.xlu0 %v695_v20 }
 0x5b1   :  { %867 = vrot.lane.b32.xlu0 %v2103_v25, %s2016_s18 }
 0x5ef   :  { %v694_v21 = vpop.xlane.xlu0 %693 }
 0x5f0   :  { %1874 = vrcp.f32 %v694_v21 }
 0x5f3   :  { %v703_v22 = vpop.permute.xlu0 %702 }
 0x5f4   :  { %1776 = vmatpush3.msra.mxu0 %v703_v22 }
 0x5f5   :  { %1785 = vmatprep.subr.mxu0 %v2008_v23 }
 0x5fd   :  { %v1875_v26 = vpop.eup %1874 }
 0x5fe   :  { %v700_v27 = vmul.f32 %v1875_v26, %v1871_v14 }
 0x600   :  { %1778 = vmatmul.mubr.msk.f32.vlgmr.msra.gmra.mxu0 %vm194_vm2, %v700_v27 }
 0x601   :  { %1786 = vmatpush3.xpose.msk.msra.mxu0 %vm194_vm2, %v870_v28  ;;  %1787 = vmatprep.mubr.msk.f32.mxu0 %vm2009_vm1, %v2008_v23 }
 0x602   :  { %1795 = vmatprep.subr.mxu0 %v2008_v23 }
 0x624   :  { %v697_v29 = vpop.xlane.xlu0 %696 }
 0x625   :  { %1876 = vrcp.f32 %v697_v29 }
 0x628   :  { %v868_v30 = vpop.permute.xlu0 %867 }
 0x629   :  { %1788 = vmatmul.mubr.msk.f32.vlgmr.msra.gmra.mxu0 %vm194_vm2, %v868_v30 }
 0x62a   :  { %1797 = vmatprep.mubr.msk.f32.mxu0 %vm2009_vm1, %v2008_v23 }
 0x632   :  { %v1877_v31 = vpop.eup %1876 }
 0x633   :  { %v701_v33 = vmul.f32 %v1877_v31, %v1873_v19 }
 0x635   :  { %1783 = vmatmul.mubr.msk.f32.vlgmr.msra.gmra.mxu1 %vm194_vm2, %v701_v33 }
 0x636   :  { %1791 = vmatpush3.xpose.msk.msra.mxu1 %vm194_vm2, %v948_v32  ;;  %1792 = vmatprep.mubr.msk.f32.mxu1 %vm2009_vm1, %v2008_v23 }
 0x637   :  { %1800 = vmatprep.subr.mxu1 %v2008_v23 }
 0x639   :  { %1793 = vmatmul.mubr.msk.f32.vlgmr.msra.gmra.mxu1 %vm194_vm2, %v946_v34 }
 0x63a   :  { %1802 = vmatprep.mubr.msk.f32.mxu1 %vm2009_vm1, %v2008_v23 }
 0x6c0   :  { %v2177_v35 = vpop.f32.mrf.mxu0 }
 0x6c2   :  { %v1779_v36 = vpop.f32.mrf.mxu0 }
 0x6e9   :  { %v941_v38 = vpop.f32.mrf.mxu0 }
 0x6ea   :  { %v942_v39 = vadd.f32 %v941_v38, %v866_v37 }
 0x6eb   :  { %v1789_v40 = vpop.f32.mrf.mxu0 }
 0x6ec   :  { %v1023_v41 = vsel %vm194_vm2, %v942_v39, -inf }
 0x6ed   :  { %1024 = vmax.xlane.f32.xlu0 %v1023_v41 }
 0x6f5   :  { %v2180_v42 = vpop.f32.mrf.mxu1 }
 0x6f7   :  { %v1784_v43 = vpop.f32.mrf.mxu1 }
 0x6f9   :  { %v1019_v44 = vpop.f32.mrf.mxu1 }
 0x6fa   :  { %v1020_v45 = vadd.f32 %v1019_v44, %v866_v37  ;;  %v1556_v44 = vld [vmem:[#allocation8 + $0x18] sm:$0xff] }
 0x6fb   :  { %v1794_v46 = vpop.f32.mrf.mxu1 }
 0x6fc   :  { %v1026_v47 = vsel %vm194_vm2, %v1020_v45, -inf  ;;  %v1554_v46 = vld [vmem:[#allocation8 + $0x8] sm:$0xff] }
 0x6fd   :  { %1027 = vmax.xlane.f32.xlu1 %v1026_v47 }
 0x70e   :  { %1121 = vrot.lane.b32.xlu1 %v2101_v24, %s2017_s19 }
 0x712   :  { %1212 = vrot.lane.b32.xlu1 %v2103_v25, %s2018_s20 }
 0x716   :  { %1290 = vrot.lane.b32.xlu1 %v2101_v24, %s2018_s20 }
 0x71a   :  { %1288 = vrot.lane.b32.xlu1 %v2101_v24, %s2019_s21 }
 0x776   :  { %v1025_v48 = vpop.xlane.xlu0 %1024 }
 0x777   :  { %v1029_v49 = vsub.f32 %v942_v39, %v1025_v48  ;;  %v1553_v48 = vld [vmem:[#allocation8] sm:$0xff] }
 0x779   :  { %v1031_v50 = vmul.f32 1.442695, %v1029_v49 }
 0x77b   :  { %1878 = vpow2.f32 %v1031_v50 }
 0x786   :  { %v1028_v51 = vpop.xlane.xlu1 %1027 }
 0x787   :  { %v1030_v55 = vsub.f32 %v1020_v45, %v1028_v51 }
 0x788   :  { %v1879_v52 = vpop.eup %1878 }
 0x789   :  { %v1035_v53 = vsel %vm194_vm2, %v1879_v52, 0.0  ;;  %v1033_v56 = vmul.f32 1.442695, %v1030_v55 }
 0x78a   :  { %1036 = vadd.xlane.f32.xlu0 %v1035_v53  ;;  %v1122_v54 = vpop.permute.xlu1 %1121 }
 0x78b   :  { %1801 = vmatpush3.msra.mxu1 %v1122_v54  ;;  %1880 = vpow2.f32 %v1033_v56 }
 0x78c   :  { %1810 = vmatprep.subr.mxu1 %v2008_v23 }
 0x78e   :  { %v1213_v63 = vpop.permute.xlu1 %1212 }
 0x792   :  { %v1291_v5 = vpop.permute.xlu1 %1290 }
 0x796   :  { %v1289_v7 = vpop.permute.xlu1 %1288 }
 0x798   :  { %v1881_v57 = vpop.eup %1880 }
 0x799   :  { %v1038_v58 = vsel %vm194_vm2, %v1881_v57, 0.0 }
 0x7a0   :  { %1045 = vrot.lane.b32.xlu0 %v2103_v25, %s2017_s19 }
 0x7bf   :  { %1039 = vadd.xlane.f32.xlu0 %v1038_v58 }
 0x7d5   :  { %1210 = vrot.lane.b32.xlu0 %v2103_v25, %s2019_s21 }
 0x813   :  { %v1037_v59 = vpop.xlane.xlu0 %1036 }
 0x814   :  { %1882 = vrcp.f32 %v1037_v59 }
 0x817   :  { %v1046_v60 = vpop.permute.xlu0 %1045 }
 0x818   :  { %1796 = vmatpush3.msra.mxu0 %v1046_v60 }
 0x819   :  { %1805 = vmatprep.subr.mxu0 %v2008_v23 }
 0x821   :  { %v1883_v61 = vpop.eup %1882 }
 0x822   :  { %v1043_v62 = vmul.f32 %v1883_v61, %v1879_v52 }
 0x824   :  { %1798 = vmatmul.mubr.msk.f32.vlgmr.msra.gmra.mxu0 %vm194_vm2, %v1043_v62 }
 0x825   :  { %1806 = vmatpush3.xpose.msk.msra.mxu0 %vm194_vm2, %v1213_v63  ;;  %1807 = vmatprep.mubr.msk.f32.mxu0 %vm2009_vm1, %v2008_v23 }
 0x826   :  { %1815 = vmatprep.subr.mxu0 %v2008_v23 }
 0x848   :  { %v1040_v2 = vpop.xlane.xlu0 %1039 }
 0x849   :  { %1884 = vrcp.f32 %v1040_v2 }
 0x84c   :  { %v1211_v3 = vpop.permute.xlu0 %1210 }
 0x84d   :  { %1808 = vmatmul.mubr.msk.f32.vlgmr.msra.gmra.mxu0 %vm194_vm2, %v1211_v3 }
 0x84e   :  { %1817 = vmatprep.mubr.msk.f32.mxu0 %vm2009_vm1, %v2008_v23 }
 0x856   :  { %v1885_v4 = vpop.eup %1884 }
 0x857   :  { %v1044_v6 = vmul.f32 %v1885_v4, %v1881_v57 }
 0x859   :  { %1803 = vmatmul.mubr.msk.f32.vlgmr.msra.gmra.mxu1 %vm194_vm2, %v1044_v6 }
 0x85a   :  { %1811 = vmatpush3.xpose.msk.msra.mxu1 %vm194_vm2, %v1291_v5  ;;  %1812 = vmatprep.mubr.msk.f32.mxu1 %vm2009_vm1, %v2008_v23 }
 0x85b   :  { %1820 = vmatprep.subr.mxu1 %v2008_v23 }
 0x85d   :  { %1813 = vmatmul.mubr.msk.f32.vlgmr.msra.gmra.mxu1 %vm194_vm2, %v1289_v7 }
 0x85e   :  { %1822 = vmatprep.mubr.msk.f32.mxu1 %vm2009_vm1, %v2008_v23 }
 0x8e4   :  { %v1117_v8 = vpop.f32.mrf.mxu0 }
 0x8e6   :  { %v1799_v9 = vpop.f32.mrf.mxu0 }
 0x90d   :  { %v1284_v11 = vpop.f32.mrf.mxu0 }
 0x90e   :  { %v1285_v12 = vadd.f32 %v1284_v11, %v1209_v10 }
 0x90f   :  { %v1809_v13 = vpop.f32.mrf.mxu0 }
 0x910   :  { %v1366_v14 = vsel %vm194_vm2, %v1285_v12, -inf }
 0x911   :  { %1367 = vmax.xlane.f32.xlu0 %v1366_v14 }
 0x919   :  { %v1193_v15 = vpop.f32.mrf.mxu1 }
 0x91b   :  { %v1804_v16 = vpop.f32.mrf.mxu1 }
 0x91d   :  { %v1362_v17 = vpop.f32.mrf.mxu1 }
 0x91e   :  { %v1363_v18 = vadd.f32 %v1362_v17, %v1209_v10 }
 0x91f   :  { %v1814_v19 = vpop.f32.mrf.mxu1 }
 0x920   :  { %v1369_v20 = vsel %vm194_vm2, %v1363_v18, -inf }
 0x921   :  { %1370 = vmax.xlane.f32.xlu1 %v1369_v20 }
 0x932   :  { %1464 = vrot.lane.b32.xlu1 %v2101_v24, %s2020_s22 }
 0x936   :  { %856 = vrot.lane.b32.xlu1 %v2177_v35, %s2005_s24 }
 0x93a   :  { %858 = vrot.lane.b32.xlu1 %v2180_v42, %s2005_s24 }
 0x93e   :  { %1201 = vrot.lane.b32.xlu1 %v1193_v15, %s2021_s25 }
 0x99a   :  { %v1368_v23 = vpop.xlane.xlu0 %1367 }
 0x99b   :  { %v1372_v21 = vsub.f32 %v1285_v12, %v1368_v23 }
 0x99d   :  { %v1374_v22 = vmul.f32 1.442695, %v1372_v21 }
 0x99f   :  { %1886 = vpow2.f32 %v1374_v22 }
 0x9aa   :  { %v1371_v26 = vpop.xlane.xlu1 %1370 }
 0x9ab   :  { %v1373_v27 = vsub.f32 %v1363_v18, %v1371_v26 }
 0x9ac   :  { %v1887_v28 = vpop.eup %1886 }
 0x9ad   :  { %v1376_v29 = vmul.f32 1.442695, %v1373_v27  ;;  %v1378_v30 = vsel %vm194_vm2, %v1887_v28, 0.0 }
 0x9ae   :  { %1379 = vadd.xlane.f32.xlu0 %v1378_v30  ;;  %v1465_v24 = vpop.permute.xlu1 %1464 }
 0x9af   :  { %1888 = vpow2.f32 %v1376_v29  ;;  %1821 = vmatpush3.msra.mxu1 %v1465_v24 }
 0x9b2   :  { %v857_v31 = vpop.permute.xlu1 %856 }
 0x9b3   :  { %863 = vst.msk [vmem:[#allocation2] sm:$0xff] %vm862_vm3, %v857_v31 }
 0x9b6   :  { %v859_v32 = vpop.permute.xlu1 %858 }
 0x9b7   :  { %864 = vst.msk [vmem:[#allocation2 + $0x8] sm:$0xff] %vm862_vm3, %v859_v32 }
 0x9ba   :  { %v1202_v33 = vpop.permute.xlu1 %1201 }
 0x9bb   :  { %1207 = vst.msk [vmem:[#allocation2 + $0x8] sm:$0xff] %vm1205_vm4, %v1202_v33 }
 0x9bc   :  { %v1889_v34 = vpop.eup %1888 }
 0x9bd   :  { %v1381_v35 = vsel %vm194_vm2, %v1889_v34, 0.0 }
 0x9be   :  { %1382 = vadd.xlane.f32.xlu0 %v1381_v35 }
 0x9d4   :  { %1388 = vrot.lane.b32.xlu0 %v2103_v25, %s2020_s22  ;;  %v1555_v25 = vld [vmem:[#allocation8 + $0x10] sm:$0xff] }
 0x9d8   :  { %1199 = vrot.lane.b32.xlu0 %v1117_v8, %s2021_s25 }
 0xa37   :  { %v1380_v36 = vpop.xlane.xlu0 %1379 }
 0xa38   :  { %1890 = vrcp.f32 %v1380_v36 }
 0xa45   :  { %v1891_v38 = vpop.eup %1890 }
 0xa46   :  { %v1386_v40 = vmul.f32 %v1891_v38, %v1887_v28 }
 0xa47   :  { %v1383_v37 = vpop.xlane.xlu0 %1382 }
 0xa48   :  { %1892 = vrcp.f32 %v1383_v37 }
 0xa4b   :  { %v1389_v39 = vpop.permute.xlu0 %1388 }
 0xa4c   :  { %1816 = vmatpush3.msra.mxu0 %v1389_v39 }
 0xa4d   :  { %1818 = vmatmul.mubr.msk.f32.vlgmr.msra.gmra.mxu0 %vm194_vm2, %v1386_v40  ;;  %1825 = vmatprep.subr.mxu0 %v1556_v44 }
 0xa4e   :  { %1826 = vmatpush3.msra.mxu0 %v1556_v44 }
 0xa4f   :  { %v1200_v41 = vpop.permute.xlu0 %1199  ;;  %1827 = vmatprep.subr.mxu0 %v1555_v25 }
 0xa50   :  { %1206 = vst.msk [vmem:[#allocation2] sm:$0xff] %vm1205_vm4, %v1200_v41  ;;  %1828 = vmatpush3.msra.mxu0 %v1555_v25 }
 0xa51   :  { %1829 = vmatprep.subr.mxu0 %v1554_v46 }
 0xa52   :  { %1830 = vmatpush3.msra.mxu0 %v1554_v46 }
 0xa53   :  { %1831 = vmatprep.subr.mxu0 %v1553_v48 }
 0xa54   :  { %1832 = vmatpush3.msra.mxu0 %v1553_v48 }
 0xa55   :  { %v1893_v42 = vpop.eup %1892 }
 0xa56   :  { %v1387_v43 = vmul.f32 %v1893_v42, %v1889_v34 }
 0xa58   :  { %1823 = vmatmul.mubr.msk.f32.vlgmr.msra.gmra.mxu1 %vm194_vm2, %v1387_v43 }
 0xb0d   :  { %v1460_v45 = vpop.f32.mrf.mxu0 }
 0xb0e   :  { %1542 = vrot.lane.b32.xlu0 %v1460_v45, %s2022_s26 }
 0xb0f   :  { %v1819_v47 = vpop.f32.mrf.mxu0 }
 0xb18   :  { %v1536_v49 = vpop.f32.mrf.mxu1 }
 0xb19   :  { %1544 = vrot.lane.b32.xlu1 %v1536_v49, %s2022_s26 }
 0xb1a   :  { %v1824_v50 = vpop.f32.mrf.mxu1 }
 0xb80   :  { %v1543_v51 = vpop.permute.xlu0 %1542 }
 0xb81   :  { %1549 = vst.msk [vmem:[#allocation2] sm:$0xff] %vm1548_vm5, %v1543_v51 }
 0xb88   :  { %v1551_v52 = vld [vmem:[#allocation2] sm:$0xff] }
 0xb89   :  { %1833 = vmatprep.mubr.msk.f32.mxu0 %vm81_vm0, %v1551_v52 }
 0xb8b   :  { %v1545_v53 = vpop.permute.xlu1 %1544 }
 0xb8c   :  { %1550 = vst.msk [vmem:[#allocation2 + $0x8] sm:$0xff] %vm1548_vm5, %v1545_v53 }
 0xb93   :  { %v1552_v54 = vld [vmem:[#allocation2 + $0x8] sm:$0xff] }
 0xb94   :  { %1834 = vmatmul.mubr.msk.f32.vlgmr.msra.gmra.mxu0 %vm81_vm0, %v1552_v54 }
 0xc54   :  { %v1835_v55 = vpop.f32.mrf.mxu0 }
 0xc55   :  { %v1639_v56 = vadd.f32 %v1835_v55, %v2080_v1 }
 0xc56   :  { %v1629_v57 = vpop.f32.mrf.mxu0 }
 0xc57   :  { %1641 = vst.msk [vmem:[#allocation11 + $0x8] sm:$0xff] %vm81_vm0, %v1639_v56  ;;  %v1638_v58 = vadd.f32 %v1629_v57, %v2078_v0 }
 0xc59   :  { %1640 = vst.msk [vmem:[#allocation11] sm:$0xff] %vm81_vm0, %v1638_v58 }
 0xc5a   :  { %1985 = shalt.err (!%p1982_p10)
}
 0xc5b   :  { %1653 = dma.vmem_to_hbm [thread:$0]  %s1648_s28, 256, %s2240_s5, [#allocation5], %s2004_s23, %s2004_s23, %s2005_s24  }
 0xc5c   :  { %2000 = dma.done.wait [#allocation5], 256  }
 0xc5d   :  { %2001 = vsyncadd [#allocation5], 4294967040 }
 0xc5e   :  { %1657 = vsyncpa [#allocation4], 1 }
 0xc5f   :  { %1658 = vsyncpa [#allocation7], 1 }
 0xc60   :  { %1659 = vsyncpa [#allocation10], 1 }
 0xc61   :  { %1660 = vsyncpa [#allocation5], 1 }

</bundles_post_ra>
